<compile_context>
chip_gen: v7x
topology: tpu7x:2x2x1
jax: 0.10.0
libtpu: 0.0.40
codegen_flags: <defaults>
</compile_context>

<pallas_src>
import numpy as np
import jax
import jax.numpy as jnp
from jax.experimental import pallas as pl
from jax.experimental.pallas import tpu as pltpu

EPS = 1e-5
_PARALLEL = pltpu.CompilerParams(dimension_semantics=("parallel",))


# ----------------------------- Pallas kernels ------------------------------

def _stats(h):
    """Per-channel partial (sum, sum_of_squares) of a (Cout, TN) f32 tile -> (Cout, 2)."""
    return jnp.concatenate(
        [jnp.sum(h, axis=1, keepdims=True),
         jnp.sum(h * h, axis=1, keepdims=True)], axis=1)


def _mm_stats_kernel(x_ref, w_ref, h_ref, s_ref):
    # x_ref (K, TN) bf16, w_ref (Cout, K) bf16 -> h_ref (Cout, TN) f32 (lane dense).
    h = jnp.dot(w_ref[...], x_ref[...], preferred_element_type=jnp.float32)
    h_ref[...] = h
    s_ref[...] = _stats(h)


def _mm2_stats_kernel(c2_ref, w2_ref, cd_ref, wd_ref, h2_ref, hd_ref, s2_ref, sd_ref):
    # conv2 and the downsample conv share the same N tiles -> fused in one launch.
    h2 = jnp.dot(w2_ref[...], c2_ref[...], preferred_element_type=jnp.float32)
    h2_ref[...] = h2
    s2_ref[...] = _stats(h2)
    hd = jnp.dot(wd_ref[...], cd_ref[...], preferred_element_type=jnp.float32)
    hd_ref[...] = hd
    sd_ref[...] = _stats(hd)


def _bn_relu_kernel(h_ref, sc_ref, sh_ref, y_ref):
    # y = relu(h * scale + shift); scale/shift are per-channel (Cout, 1) f32.
    y = jnp.maximum(h_ref[...] * sc_ref[...] + sh_ref[...], 0.0)
    y_ref[...] = y.astype(y_ref.dtype)


def _bn_relu_mm_stats_kernel(h2_ref, sc_ref, sh_ref, w3_ref, h3_ref, s3_ref):
    # bn2 + relu (f32, never leaves VMEM) then conv3 matmul + bn3 partial stats.
    y2 = jnp.maximum(h2_ref[...] * sc_ref[...] + sh_ref[...], 0.0)
    h3 = jnp.dot(w3_ref[...], y2, preferred_element_type=jnp.float32)
    h3_ref[...] = h3
    s3_ref[...] = _stats(h3)


def _bn_add_relu_kernel(h3_ref, hd_ref, sc3_ref, sh3_ref, scd_ref, shd_ref, o_ref):
    # bn3 + downsample-bn + residual add + final relu, fused.
    y = (h3_ref[...] * sc3_ref[...] + sh3_ref[...]
         + hd_ref[...] * scd_ref[...] + shd_ref[...])
    o_ref[...] = jnp.maximum(y, 0.0).astype(o_ref.dtype)


# --------------------------- pallas_call wrappers ---------------------------

def _pick_tile(n):
    for t in (512, 256, 128):
        if n % t == 0:
            return t
    return n  # odd sizes: single full-width tile


def _matmul_stats(xT, wT, tn):
    k, n = xT.shape
    cout = wT.shape[0]
    t = n // tn
    return pl.pallas_call(
        _mm_stats_kernel,
        grid=(t,),
        in_specs=[pl.BlockSpec((k, tn), lambda i: (0, i)),
                  pl.BlockSpec((cout, k), lambda i: (0, 0))],      # weights stay resident
        out_specs=[pl.BlockSpec((cout, tn), lambda i: (0, i)),
                   pl.BlockSpec((None, cout, 2), lambda i: (i, 0, 0))],
        out_shape=[jax.ShapeDtypeStruct((cout, n), jnp.float32),
                   jax.ShapeDtypeStruct((t, cout, 2), jnp.float32)],
        compiler_params=_PARALLEL,
    )(xT, wT)


def _matmul2_stats(c2, w2T, cd, wdT, tn):
    k2, n = c2.shape
    co2 = w2T.shape[0]
    kd = cd.shape[0]
    cod = wdT.shape[0]
    t = n // tn
    return pl.pallas_call(
        _mm2_stats_kernel,
        grid=(t,),
        in_specs=[pl.BlockSpec((k2, tn), lambda i: (0, i)),
                  pl.BlockSpec((co2, k2), lambda i: (0, 0)),
                  pl.BlockSpec((kd, tn), lambda i: (0, i)),
                  pl.BlockSpec((cod, kd), lambda i: (0, 0))],
        out_specs=[pl.BlockSpec((co2, tn), lambda i: (0, i)),
                   pl.BlockSpec((cod, tn), lambda i: (0, i)),
                   pl.BlockSpec((None, co2, 2), lambda i: (i, 0, 0)),
                   pl.BlockSpec((None, cod, 2), lambda i: (i, 0, 0))],
        out_shape=[jax.ShapeDtypeStruct((co2, n), jnp.float32),
                   jax.ShapeDtypeStruct((cod, n), jnp.float32),
                   jax.ShapeDtypeStruct((t, co2, 2), jnp.float32),
                   jax.ShapeDtypeStruct((t, cod, 2), jnp.float32)],
        compiler_params=_PARALLEL,
    )(c2, w2T, cd, wdT)


def _bn_relu(h, scale, shift, tn, out_dtype):
    cout, n = h.shape
    t = n // tn
    return pl.pallas_call(
        _bn_relu_kernel,
        grid=(t,),
        in_specs=[pl.BlockSpec((cout, tn), lambda i: (0, i)),
                  pl.BlockSpec((cout, 1), lambda i: (0, 0)),
                  pl.BlockSpec((cout, 1), lambda i: (0, 0))],
        out_specs=pl.BlockSpec((cout, tn), lambda i: (0, i)),
        out_shape=jax.ShapeDtypeStruct((cout, n), out_dtype),
        compiler_params=_PARALLEL,
    )(h, scale, shift)


def _bn_relu_matmul_stats(h2, scale, shift, w3T, tn):
    cin, n = h2.shape
    cout = w3T.shape[0]
    t = n // tn
    return pl.pallas_call(
        _bn_relu_mm_stats_kernel,
        grid=(t,),
        in_specs=[pl.BlockSpec((cin, tn), lambda i: (0, i)),
                  pl.BlockSpec((cin, 1), lambda i: (0, 0)),
                  pl.BlockSpec((cin, 1), lambda i: (0, 0)),
                  pl.BlockSpec((cout, cin), lambda i: (0, 0))],
        out_specs=[pl.BlockSpec((cout, tn), lambda i: (0, i)),
                   pl.BlockSpec((None, cout, 2), lambda i: (i, 0, 0))],
        out_shape=[jax.ShapeDtypeStruct((cout, n), jnp.float32),
                   jax.ShapeDtypeStruct((t, cout, 2), jnp.float32)],
        compiler_params=_PARALLEL,
    )(h2, scale, shift, w3T)


def _bn_add_relu(h3, hd, sc3, sh3, scd, shd, tn):
    c, n = h3.shape
    t = n // tn
    vec = pl.BlockSpec((c, 1), lambda i: (0, 0))
    return pl.pallas_call(
        _bn_add_relu_kernel,
        grid=(t,),
        in_specs=[pl.BlockSpec((c, tn), lambda i: (0, i)),
                  pl.BlockSpec((c, tn), lambda i: (0, i)),
                  vec, vec, vec, vec],
        out_specs=pl.BlockSpec((c, tn), lambda i: (0, i)),
        out_shape=jax.ShapeDtypeStruct((c, n), jnp.float32),
        compiler_params=_PARALLEL,
    )(h3, hd, sc3, sh3, scd, shd)


# ------------------------------ JAX glue -----------------------------------

def _finalize_bn(pstats, gamma, beta, n):
    """Per-tile partial (sum, sumsq) -> per-channel scale/shift (O(C) work, f32)."""
    s = jnp.sum(pstats, axis=0)                         # (Cout, 2)
    mean = s[:, 0] / n
    var = jnp.maximum(s[:, 1] / n - mean * mean, 0.0)   # biased var (PyTorch BN training)
    scale = gamma * jax.lax.rsqrt(var + EPS)
    shift = beta - mean * scale
    return scale.reshape(-1, 1), shift.reshape(-1, 1)


def _im2col_T(x5):
    """Transposed im2col: (Cin, B, D, H, W) -> (27*Cin, B*D*Ho*Wo).

    kernel (3,3,3), stride (1,2,2), padding (1,1,1); row order (kd, kh, kw, cin).
    """
    c, b, d, h, w = x5.shape
    ho, wo = h // 2, w // 2
    xp = jnp.pad(x5, ((0, 0), (0, 0), (1, 1), (1, 1), (1, 1)))
    taps = []
    for kd in range(3):
        for kh in range(3):
            for kw in range(3):
                taps.append(xp[:, :, kd:kd + d, kh:kh + 2 * ho:2, kw:kw + 2 * wo:2])
    col = jnp.stack(taps, axis=0)                       # (27, Cin, B, D, Ho, Wo)
    return col.reshape(27 * c, b * d * ho * wo), (ho, wo)


def init_params(key, c):
    """Deterministic synthetic parameters matching the PyTorch module's shapes."""
    width = 2 * c
    ks = jax.random.split(key, 12)

    def wconv(k, shape, fan_in):
        return jax.random.normal(k, shape, jnp.float32) * (1.0 / np.sqrt(fan_in))

    def bn(kg, kb, ch):
        return (1.0 + 0.1 * jax.random.normal(kg, (ch,), jnp.float32),
                0.1 * jax.random.normal(kb, (ch,), jnp.float32))

    w1 = wconv(ks[0], (c, width), c)                        # conv1 1x1x1: C -> 2C
    g1, b1 = bn(ks[1], ks[2], width)
    w2 = wconv(ks[3], (3, 3, 3, width, width), 27 * width)  # conv2 3x3x3, s(1,2,2), DHWIO
    g2, b2 = bn(ks[4], ks[5], width)
    w3 = wconv(ks[6], (width, c), width)                    # conv3 1x1x1: 2C -> C
    g3, b3 = bn(ks[7], ks[8], c)
    wd = wconv(ks[9], (3, 3, 3, c, c), 27 * c)              # downsample conv, DHWIO
    gd, bd = bn(ks[10], ks[11], c)

    p = {"w1": w1, "g1": g1, "b1": b1, "w2": w2, "g2": g2, "b2": b2,
         "w3": w3, "g3": g3, "b3": b3, "wd": wd, "gd": gd, "bd": bd}
    # Kernel-layout weights: W^T = (Cout, K).  bf16 for the MXU (f32 accumulation);
    # conv3 kept f32 (K = 2C is tiny; keeps the residual path at full precision).
    p["w1T"] = w1.T.astype(jnp.bfloat16)
    p["w2T"] = w2.reshape(27 * width, width).T.astype(jnp.bfloat16)
    p["w3T"] = w3.T.astype(jnp.float32)
    p["wdT"] = wd.reshape(27 * c, c).T.astype(jnp.bfloat16)
    return p


def resblock3d_forward(params, x, x_ref=None):
    """ResBlock3D.forward(x, x_ref).  x: (B, D, H, W, C) channels-last.  x_ref unused."""
    del x_ref  # the PyTorch forward ignores it
    b, d, h, w, c = x.shape
    width = 2 * c
    n1 = b * d * h * w

    xT5 = jnp.moveaxis(x, -1, 0).astype(jnp.bfloat16)        # (C, B, D, H, W)
    tn1 = _pick_tile(n1)

    # conv1 (1x1x1, C->2C) matmul + bn1 partial stats, tiled over N (parallel)
    h1, ps1 = _matmul_stats(xT5.reshape(c, n1), params["w1T"], tn1)
    sc1, sh1 = _finalize_bn(ps1, params["g1"], params["b1"], n1)
    # bn1 + relu; stored bf16 because it feeds the conv2 im2col / MXU
    y1 = _bn_relu(h1, sc1, sh1, tn1, jnp.bfloat16)           # (2C, N1) bf16

    # im2col (3x3x3, stride (1,2,2), pad 1) for conv2 and for the downsample branch
    # TODO(synk): the 27-tap gather stays in XLA (built in bf16); an in-kernel tap-grid
    # (Element index_map / manual DMA) version would cut the 27x im2col HBM blowup.
    col2, (ho, wo) = _im2col_T(y1.reshape(width, b, d, h, w))
    cold, _ = _im2col_T(xT5)
    n2 = b * d * ho * wo
    tn2 = _pick_tile(n2)

    # conv2 + downsample conv matmuls (fused, shared N tiles) + their bn partial stats
    h2, hd, ps2, psd = _matmul2_stats(col2, params["w2T"], cold, params["wdT"], tn2)
    sc2, sh2 = _finalize_bn(ps2, params["g2"], params["b2"], n2)
    scd, shd = _finalize_bn(psd, params["gd"], params["bd"], n2)

    # bn2 + relu + conv3 (1x1x1, 2C->C) matmul + bn3 partial stats (fused)
    h3, ps3 = _bn_relu_matmul_stats(h2, sc2, sh2, params["w3T"], tn2)
    sc3, sh3 = _finalize_bn(ps3, params["g3"], params["b3"], n2)

    # bn3 + downsample-bn + residual add + final relu (fused)
    outT = _bn_add_relu(h3, hd, sc3, sh3, scd, shd, tn2)     # (C, N2) f32
    return jnp.moveaxis(outT.reshape(c, b, d, ho, wo), 0, -1)  # (B, D, Ho, Wo, C)


# ---------------------------- pure-JAX reference ---------------------------

def _conv3d_ref(x, w, strides, pad, dtype=jnp.bfloat16):
    # Matches the kernel path: bf16 operands, f32 accumulation (conv3 stays f32).
    return jax.lax.conv_general_dilated(
        x.astype(dtype), w.astype(dtype),
        window_strides=strides,
        padding=((pad, pad),) * 3,
        dimension_numbers=("NDHWC", "DHWIO", "NDHWC"),
        preferred_element_type=jnp.float32,
        precision=jax.lax.Precision.HIGHEST)


def _bn_train_ref(h, gamma, beta):
    mu = jnp.mean(h, axis=(0, 1, 2, 3), keepdims=True)
    var = jnp.mean((h - mu) ** 2, axis=(0, 1, 2, 3), keepdims=True)
    return (h - mu) * jax.lax.rsqrt(var + EPS) * gamma + beta


def reference_forward(params, x):
    c = x.shape[-1]
    width = 2 * c
    y = _conv3d_ref(x, params["w1"].reshape(1, 1, 1, c, width), (1, 1, 1), 0)
    y = jax.nn.relu(_bn_train_ref(y, params["g1"], params["b1"]))
    y = _conv3d_ref(y, params["w2"], (1, 2, 2), 1)
    y = jax.nn.relu(_bn_train_ref(y, params["g2"], params["b2"]))
    y = _conv3d_ref(y, params["w3"].reshape(1, 1, 1, width, c), (1, 1, 1), 0,
                    dtype=jnp.float32)
    y = _bn_train_ref(y, params["g3"], params["b3"])
    ident = _conv3d_ref(x, params["wd"], (1, 2, 2), 1)
    ident = _bn_train_ref(ident, params["gd"], params["bd"])
    return jax.nn.relu(y + ident)


# --------------------------------- main -------------------------------------

if __name__ == "__main__":
    key = jax.random.PRNGKey(0)
    kx, kxr, kp = jax.random.split(key, 3)

    B, C, D, H, W = 2, 4, 4, 16, 16
    # PyTorch would take NCDHW; here activations are channels-last (B, D, H, W, C) and the
    # wrapper transposes to the lane-dense (C, N) kernel layout.
    x = jax.random.normal(kx, (B, D, H, W, C), jnp.float32)
    x_ref_in = jax.random.normal(kxr, (B, D, H, W, C), jnp.float32)  # unused by forward()

    params = init_params(kp, C)

    fwd = jax.jit(resblock3d_forward)
    out = jax.block_until_ready(fwd(params, x, x_ref_in))
    assert out.shape == (B, D, H // 2, W // 2, C)

    ref = jax.block_until_ready(reference_forward(params, x))
    # MXU inputs are bf16 in both paths; tolerance covers accumulation-order and
    # bf16 rounding-boundary differences (BN math is f32 in both paths).
    np.testing.assert_allclose(np.asarray(out), np.asarray(ref), rtol=5e-3, atol=5e-3)

    print("KERNEL_OK")
</pallas_src>

<mosaic_0001>
module attributes {stable_mosaic.version = 11 : i64} {
  func.func @_mm_stats_kernel(%arg0: i32, %arg1: memref<4x512xbf16, #tpu.memory_space<vmem>>, %arg2: memref<8x4xbf16, #tpu.memory_space<vmem>>, %arg3: memref<8x512xf32, #tpu.memory_space<vmem>>, %arg4: memref<1x8x2xf32, #tpu.memory_space<vmem>>) attributes {dimension_semantics = [#tpu.dimension_semantics<parallel>], iteration_bounds = array<i64: 4>, scalar_prefetch = 0 : i64, scratch_operands = 0 : i64, tpu.core_type = #tpu.core_type<tc>, window_params = [{transform_indices = @transform_0, window_bounds = array<i64: 4, 512>}, {pipeline_mode = #tpu.pipeline_mode<synchronous>, transform_indices = @transform_1, window_bounds = array<i64: 8, 4>}, {transform_indices = @transform_2, window_bounds = array<i64: 8, 512>}, {transform_indices = @transform_3, window_bounds = array<i64: 1, 8, 2>}]} {
    %c0 = arith.constant 0 : index
    %c0_0 = arith.constant 0 : index
    %0 = vector.load %arg2[%c0, %c0_0] : memref<8x4xbf16, #tpu.memory_space<vmem>>, vector<8x4xbf16>
    %c0_1 = arith.constant 0 : index
    %c0_2 = arith.constant 0 : index
    %1 = vector.load %arg1[%c0_1, %c0_2] : memref<4x512xbf16, #tpu.memory_space<vmem>>, vector<4x512xbf16>
    %cst = arith.constant dense<0.000000e+00> : vector<8x512xf32>
    %2 = tpu.matmul %0, %1, %cst {dimension_numbers = #tpu.dot_dimension_numbers<[1], [0], [0], [1], [0, 0, 1, 1], [], []>} : vector<8x4xbf16>, vector<4x512xbf16>, vector<8x512xf32> -> vector<8x512xf32>
    %c0_3 = arith.constant 0 : index
    %c0_4 = arith.constant 0 : index
    %3 = vector.load %arg3[%c0_3, %c0_4] : memref<8x512xf32, #tpu.memory_space<vmem>>, vector<8x512xf32>
    tpu.vector_store %arg3[%c0_3, %c0_4], %2 {strides = array<i32>} : memref<8x512xf32, #tpu.memory_space<vmem>>, vector<8x512xf32>,
    %cst_5 = arith.constant dense<0.000000e+00> : vector<8xf32>
    %4 = vector.multi_reduction <add>, %2, %cst_5 [1] : vector<8x512xf32> to vector<8xf32>
    %5 = vector.shape_cast %4 : vector<8xf32> to vector<8x1xf32>
    %6 = arith.mulf %2, %2 : vector<8x512xf32>
    %cst_6 = arith.constant dense<0.000000e+00> : vector<8xf32>
    %7 = vector.multi_reduction <add>, %6, %cst_6 [1] : vector<8x512xf32> to vector<8xf32>
    %8 = vector.shape_cast %7 : vector<8xf32> to vector<8x1xf32>
    %9 = tpu.concatenate %5, %8 in 1 : vector<8x1xf32>, vector<8x1xf32> -> vector<8x2xf32>
    %c0_7 = arith.constant 0 : index
    %c0_8 = arith.constant 0 : index
    %c0_9 = arith.constant 0 : index
    %10 = vector.load %arg4[%c0_7, %c0_8, %c0_9] : memref<1x8x2xf32, #tpu.memory_space<vmem>>, vector<1x8x2xf32>
    %11 = vector.shape_cast %10 : vector<1x8x2xf32> to vector<8x2xf32>
    %12 = vector.shape_cast %9 : vector<8x2xf32> to vector<1x8x2xf32>
    tpu.vector_store %arg4[%c0_7, %c0_8, %c0_9], %12 {strides = array<i32>} : memref<1x8x2xf32, #tpu.memory_space<vmem>>, vector<1x8x2xf32>,
    return
  }
  func.func @transform_0(%arg0: i32) -> (i32, i32) {
    %c0_i32 = arith.constant 0 : i32
    %c0_i32_0 = arith.constant 0 : i32
    return %c0_i32, %arg0 : i32, i32
  }
  func.func @transform_1(%arg0: i32) -> (i32, i32) {
    %c0_i32 = arith.constant 0 : i32
    %c0_i32_0 = arith.constant 0 : i32
    %c0_i32_1 = arith.constant 0 : i32
    return %c0_i32, %c0_i32_0 : i32, i32
  }
  func.func @transform_2(%arg0: i32) -> (i32, i32) {
    %c0_i32 = arith.constant 0 : i32
    %c0_i32_0 = arith.constant 0 : i32
    return %c0_i32, %arg0 : i32, i32
  }
  func.func @transform_3(%arg0: i32) -> (i32, i32, i32) {
    %c0_i32 = arith.constant 0 : i32
    %c0_i32_0 = arith.constant 0 : i32
    %c0_i32_1 = arith.constant 0 : i32
    return %arg0, %c0_i32, %c0_i32_0 : i32, i32, i32
  }
}

module attributes {stable_mosaic.version = 11 : i64} {
  func.func @_bn_relu_kernel(%arg0: i32, %arg1: memref<8x512xf32, #tpu.memory_space<vmem>>, %arg2: memref<8x1xf32, #tpu.memory_space<vmem>>, %arg3: memref<8x1xf32, #tpu.memory_space<vmem>>, %arg4: memref<8x512xbf16, #tpu.memory_space<vmem>>) attributes {dimension_semantics = [#tpu.dimension_semantics<parallel>], iteration_bounds = array<i64: 4>, scalar_prefetch = 0 : i64, scratch_operands = 0 : i64, tpu.core_type = #tpu.core_type<tc>, window_params = [{transform_indices = @transform_0, window_bounds = array<i64: 8, 512>}, {pipeline_mode = #tpu.pipeline_mode<synchronous>, transform_indices = @transform_1, window_bounds = array<i64: 8, 1>}, {pipeline_mode = #tpu.pipeline_mode<synchronous>, transform_indices = @transform_2, window_bounds = array<i64: 8, 1>}, {transform_indices = @transform_3, window_bounds = array<i64: 8, 512>}]} {
    %c0 = arith.constant 0 : index
    %c0_0 = arith.constant 0 : index
    %0 = vector.load %arg1[%c0, %c0_0] : memref<8x512xf32, #tpu.memory_space<vmem>>, vector<8x512xf32>
    %c0_1 = arith.constant 0 : index
    %c0_2 = arith.constant 0 : index
    %1 = vector.load %arg2[%c0_1, %c0_2] : memref<8x1xf32, #tpu.memory_space<vmem>>, vector<8x1xf32>
    %2 = vector.broadcast %1 : vector<8x1xf32> to vector<8x512xf32>
    %3 = arith.mulf %0, %2 : vector<8x512xf32>
    %c0_3 = arith.constant 0 : index
    %c0_4 = arith.constant 0 : index
    %4 = vector.load %arg3[%c0_3, %c0_4] : memref<8x1xf32, #tpu.memory_space<vmem>>, vector<8x1xf32>
    %5 = vector.broadcast %4 : vector<8x1xf32> to vector<8x512xf32>
    %6 = arith.addf %3, %5 : vector<8x512xf32>
    %cst = arith.constant 0.000000e+00 : f32
    %7 = vector.broadcast %cst : f32 to vector<8x512xf32>
    %8 = arith.maximumf %6, %7 : vector<8x512xf32>
    %9 = arith.truncf %8 : vector<8x512xf32> to vector<8x512xbf16>
    %c0_5 = arith.constant 0 : index
    %c0_6 = arith.constant 0 : index
    %10 = vector.load %arg4[%c0_5, %c0_6] : memref<8x512xbf16, #tpu.memory_space<vmem>>, vector<8x512xbf16>
    tpu.vector_store %arg4[%c0_5, %c0_6], %9 {strides = array<i32>} : memref<8x512xbf16, #tpu.memory_space<vmem>>, vector<8x512xbf16>,
    return
  }
  func.func @transform_0(%arg0: i32) -> (i32, i32) {
    %c0_i32 = arith.constant 0 : i32
    %c0_i32_0 = arith.constant 0 : i32
    return %c0_i32, %arg0 : i32, i32
  }
  func.func @transform_1(%arg0: i32) -> (i32, i32) {
    %c0_i32 = arith.constant 0 : i32
    %c0_i32_0 = arith.constant 0 : i32
    %c0_i32_1 = arith.constant 0 : i32
    return %c0_i32, %c0_i32_0 : i32, i32
  }
  func.func @transform_2(%arg0: i32) -> (i32, i32) {
    %c0_i32 = arith.constant 0 : i32
    %c0_i32_0 = arith.constant 0 : i32
    %c0_i32_1 = arith.constant 0 : i32
    return %c0_i32, %c0_i32_0 : i32, i32
  }
  func.func @transform_3(%arg0: i32) -> (i32, i32) {
    %c0_i32 = arith.constant 0 : i32
    %c0_i32_0 = arith.constant 0 : i32
    return %c0_i32, %arg0 : i32, i32
  }
}

module attributes {stable_mosaic.version = 11 : i64} {
  func.func @_mm2_stats_kernel(%arg0: i32, %arg1: memref<216x512xbf16, #tpu.memory_space<vmem>>, %arg2: memref<8x216xbf16, #tpu.memory_space<vmem>>, %arg3: memref<108x512xbf16, #tpu.memory_space<vmem>>, %arg4: memref<4x108xbf16, #tpu.memory_space<vmem>>, %arg5: memref<8x512xf32, #tpu.memory_space<vmem>>, %arg6: memref<4x512xf32, #tpu.memory_space<vmem>>, %arg7: memref<1x8x2xf32, #tpu.memory_space<vmem>>, %arg8: memref<1x4x2xf32, #tpu.memory_space<vmem>>) attributes {dimension_semantics = [#tpu.dimension_semantics<parallel>], iteration_bounds = array<i64: 1>, scalar_prefetch = 0 : i64, scratch_operands = 0 : i64, tpu.core_type = #tpu.core_type<tc>, window_params = [{transform_indices = @transform_0, window_bounds = array<i64: 216, 512>}, {pipeline_mode = #tpu.pipeline_mode<synchronous>, transform_indices = @transform_1, window_bounds = array<i64: 8, 216>}, {transform_indices = @transform_2, window_bounds = array<i64: 108, 512>}, {pipeline_mode = #tpu.pipeline_mode<synchronous>, transform_indices = @transform_3, window_bounds = array<i64: 4, 108>}, {transform_indices = @transform_4, window_bounds = array<i64: 8, 512>}, {transform_indices = @transform_5, window_bounds = array<i64: 4, 512>}, {transform_indices = @transform_6, window_bounds = array<i64: 1, 8, 2>}, {transform_indices = @transform_7, window_bounds = array<i64: 1, 4, 2>}]} {
    %c0 = arith.constant 0 : index
    %c0_0 = arith.constant 0 : index
    %0 = vector.load %arg2[%c0, %c0_0] : memref<8x216xbf16, #tpu.memory_space<vmem>>, vector<8x216xbf16>
    %c0_1 = arith.constant 0 : index
    %c0_2 = arith.constant 0 : index
    %1 = vector.load %arg1[%c0_1, %c0_2] : memref<216x512xbf16, #tpu.memory_space<vmem>>, vector<216x512xbf16>
    %cst = arith.constant dense<0.000000e+00> : vector<8x512xf32>
    %2 = tpu.matmul %0, %1, %cst {dimension_numbers = #tpu.dot_dimension_numbers<[1], [0], [0], [1], [0, 0, 1, 1], [], []>} : vector<8x216xbf16>, vector<216x512xbf16>, vector<8x512xf32> -> vector<8x512xf32>
    %c0_3 = arith.constant 0 : index
    %c0_4 = arith.constant 0 : index
    %3 = vector.load %arg5[%c0_3, %c0_4] : memref<8x512xf32, #tpu.memory_space<vmem>>, vector<8x512xf32>
    tpu.vector_store %arg5[%c0_3, %c0_4], %2 {strides = array<i32>} : memref<8x512xf32, #tpu.memory_space<vmem>>, vector<8x512xf32>,
    %cst_5 = arith.constant dense<0.000000e+00> : vector<8xf32>
    %4 = vector.multi_reduction <add>, %2, %cst_5 [1] : vector<8x512xf32> to vector<8xf32>
    %5 = vector.shape_cast %4 : vector<8xf32> to vector<8x1xf32>
    %6 = arith.mulf %2, %2 : vector<8x512xf32>
    %cst_6 = arith.constant dense<0.000000e+00> : vector<8xf32>
    %7 = vector.multi_reduction <add>, %6, %cst_6 [1] : vector<8x512xf32> to vector<8xf32>
    %8 = vector.shape_cast %7 : vector<8xf32> to vector<8x1xf32>
    %9 = tpu.concatenate %5, %8 in 1 : vector<8x1xf32>, vector<8x1xf32> -> vector<8x2xf32>
    %c0_7 = arith.constant 0 : index
    %c0_8 = arith.constant 0 : index
    %c0_9 = arith.constant 0 : index
    %10 = vector.load %arg7[%c0_7, %c0_8, %c0_9] : memref<1x8x2xf32, #tpu.memory_space<vmem>>, vector<1x8x2xf32>
    %11 = vector.shape_cast %10 : vector<1x8x2xf32> to vector<8x2xf32>
    %12 = vector.shape_cast %9 : vector<8x2xf32> to vector<1x8x2xf32>
    tpu.vector_store %arg7[%c0_7, %c0_8, %c0_9], %12 {strides = array<i32>} : memref<1x8x2xf32, #tpu.memory_space<vmem>>, vector<1x8x2xf32>,
    %c0_10 = arith.constant 0 : index
    %c0_11 = arith.constant 0 : index
    %13 = vector.load %arg4[%c0_10, %c0_11] : memref<4x108xbf16, #tpu.memory_space<vmem>>, vector<4x108xbf16>
    %c0_12 = arith.constant 0 : index
    %c0_13 = arith.constant 0 : index
    %14 = vector.load %arg3[%c0_12, %c0_13] : memref<108x512xbf16, #tpu.memory_space<vmem>>, vector<108x512xbf16>
    %cst_14 = arith.constant dense<0.000000e+00> : vector<4x512xf32>
    %15 = tpu.matmul %13, %14, %cst_14 {dimension_numbers = #tpu.dot_dimension_numbers<[1], [0], [0], [1], [0, 0, 1, 1], [], []>} : vector<4x108xbf16>, vector<108x512xbf16>, vector<4x512xf32> -> vector<4x512xf32>
    %c0_15 = arith.constant 0 : index
    %c0_16 = arith.constant 0 : index
    %16 = vector.load %arg6[%c0_15, %c0_16] : memref<4x512xf32, #tpu.memory_space<vmem>>, vector<4x512xf32>
    tpu.vector_store %arg6[%c0_15, %c0_16], %15 {strides = array<i32>} : memref<4x512xf32, #tpu.memory_space<vmem>>, vector<4x512xf32>,
    %cst_17 = arith.constant dense<0.000000e+00> : vector<4xf32>
    %17 = vector.multi_reduction <add>, %15, %cst_17 [1] : vector<4x512xf32> to vector<4xf32>
    %18 = vector.shape_cast %17 : vector<4xf32> to vector<4x1xf32>
    %19 = arith.mulf %15, %15 : vector<4x512xf32>
    %cst_18 = arith.constant dense<0.000000e+00> : vector<4xf32>
    %20 = vector.multi_reduction <add>, %19, %cst_18 [1] : vector<4x512xf32> to vector<4xf32>
    %21 = vector.shape_cast %20 : vector<4xf32> to vector<4x1xf32>
    %22 = tpu.concatenate %18, %21 in 1 : vector<4x1xf32>, vector<4x1xf32> -> vector<4x2xf32>
    %c0_19 = arith.constant 0 : index
    %c0_20 = arith.constant 0 : index
    %c0_21 = arith.constant 0 : index
    %23 = vector.load %arg8[%c0_19, %c0_20, %c0_21] : memref<1x4x2xf32, #tpu.memory_space<vmem>>, vector<1x4x2xf32>
    %24 = vector.shape_cast %23 : vector<1x4x2xf32> to vector<4x2xf32>
    %25 = vector.shape_cast %22 : vector<4x2xf32> to vector<1x4x2xf32>
    tpu.vector_store %arg8[%c0_19, %c0_20, %c0_21], %25 {strides = array<i32>} : memref<1x4x2xf32, #tpu.memory_space<vmem>>, vector<1x4x2xf32>,
    return
  }
  func.func @transform_0(%arg0: i32) -> (i32, i32) {
    %c0_i32 = arith.constant 0 : i32
    %c0_i32_0 = arith.constant 0 : i32
    return %c0_i32, %arg0 : i32, i32
  }
  func.func @transform_1(%arg0: i32) -> (i32, i32) {
    %c0_i32 = arith.constant 0 : i32
    %c0_i32_0 = arith.constant 0 : i32
    %c0_i32_1 = arith.constant 0 : i32
    return %c0_i32, %c0_i32_0 : i32, i32
  }
  func.func @transform_2(%arg0: i32) -> (i32, i32) {
    %c0_i32 = arith.constant 0 : i32
    %c0_i32_0 = arith.constant 0 : i32
    return %c0_i32, %arg0 : i32, i32
  }
  func.func @transform_3(%arg0: i32) -> (i32, i32) {
    %c0_i32 = arith.constant 0 : i32
    %c0_i32_0 = arith.constant 0 : i32
    %c0_i32_1 = arith.constant 0 : i32
    return %c0_i32, %c0_i32_0 : i32, i32
  }
  func.func @transform_4(%arg0: i32) -> (i32, i32) {
    %c0_i32 = arith.constant 0 : i32
    %c0_i32_0 = arith.constant 0 : i32
    return %c0_i32, %arg0 : i32, i32
  }
  func.func @transform_5(%arg0: i32) -> (i32, i32) {
    %c0_i32 = arith.constant 0 : i32
    %c0_i32_0 = arith.constant 0 : i32
    return %c0_i32, %arg0 : i32, i32
  }
  func.func @transform_6(%arg0: i32) -> (i32, i32, i32) {
    %c0_i32 = arith.constant 0 : i32
    %c0_i32_0 = arith.constant 0 : i32
    %c0_i32_1 = arith.constant 0 : i32
    return %arg0, %c0_i32, %c0_i32_0 : i32, i32, i32
  }
  func.func @transform_7(%arg0: i32) -> (i32, i32, i32) {
    %c0_i32 = arith.constant 0 : i32
    %c0_i32_0 = arith.constant 0 : i32
    %c0_i32_1 = arith.constant 0 : i32
    return %arg0, %c0_i32, %c0_i32_0 : i32, i32, i32
  }
}

module attributes {stable_mosaic.version = 11 : i64} {
  func.func @_bn_relu_mm_stats_kernel(%arg0: i32, %arg1: memref<8x512xf32, #tpu.memory_space<vmem>>, %arg2: memref<8x1xf32, #tpu.memory_space<vmem>>, %arg3: memref<8x1xf32, #tpu.memory_space<vmem>>, %arg4: memref<4x8xf32, #tpu.memory_space<vmem>>, %arg5: memref<4x512xf32, #tpu.memory_space<vmem>>, %arg6: memref<1x4x2xf32, #tpu.memory_space<vmem>>) attributes {dimension_semantics = [#tpu.dimension_semantics<parallel>], iteration_bounds = array<i64: 1>, scalar_prefetch = 0 : i64, scratch_operands = 0 : i64, tpu.core_type = #tpu.core_type<tc>, window_params = [{transform_indices = @transform_0, window_bounds = array<i64: 8, 512>}, {pipeline_mode = #tpu.pipeline_mode<synchronous>, transform_indices = @transform_1, window_bounds = array<i64: 8, 1>}, {pipeline_mode = #tpu.pipeline_mode<synchronous>, transform_indices = @transform_2, window_bounds = array<i64: 8, 1>}, {pipeline_mode = #tpu.pipeline_mode<synchronous>, transform_indices = @transform_3, window_bounds = array<i64: 4, 8>}, {transform_indices = @transform_4, window_bounds = array<i64: 4, 512>}, {transform_indices = @transform_5, window_bounds = array<i64: 1, 4, 2>}]} {
    %c0 = arith.constant 0 : index
    %c0_0 = arith.constant 0 : index
    %0 = vector.load %arg1[%c0, %c0_0] : memref<8x512xf32, #tpu.memory_space<vmem>>, vector<8x512xf32>
    %c0_1 = arith.constant 0 : index
    %c0_2 = arith.constant 0 : index
    %1 = vector.load %arg2[%c0_1, %c0_2] : memref<8x1xf32, #tpu.memory_space<vmem>>, vector<8x1xf32>
    %2 = vector.broadcast %1 : vector<8x1xf32> to vector<8x512xf32>
    %3 = arith.mulf %0, %2 : vector<8x512xf32>
    %c0_3 = arith.constant 0 : index
    %c0_4 = arith.constant 0 : index
    %4 = vector.load %arg3[%c0_3, %c0_4] : memref<8x1xf32, #tpu.memory_space<vmem>>, vector<8x1xf32>
    %5 = vector.broadcast %4 : vector<8x1xf32> to vector<8x512xf32>
    %6 = arith.addf %3, %5 : vector<8x512xf32>
    %cst = arith.constant 0.000000e+00 : f32
    %7 = vector.broadcast %cst : f32 to vector<8x512xf32>
    %8 = arith.maximumf %6, %7 : vector<8x512xf32>
    %c0_5 = arith.constant 0 : index
    %c0_6 = arith.constant 0 : index
    %9 = vector.load %arg4[%c0_5, %c0_6] : memref<4x8xf32, #tpu.memory_space<vmem>>, vector<4x8xf32>
    %cst_7 = arith.constant dense<0.000000e+00> : vector<4x512xf32>
    %10 = tpu.matmul %9, %8, %cst_7 {dimension_numbers = #tpu.dot_dimension_numbers<[1], [0], [0], [1], [0, 0, 1, 1], [], []>} : vector<4x8xf32>, vector<8x512xf32>, vector<4x512xf32> -> vector<4x512xf32>
    %c0_8 = arith.constant 0 : index
    %c0_9 = arith.constant 0 : index
    %11 = vector.load %arg5[%c0_8, %c0_9] : memref<4x512xf32, #tpu.memory_space<vmem>>, vector<4x512xf32>
    tpu.vector_store %arg5[%c0_8, %c0_9], %10 {strides = array<i32>} : memref<4x512xf32, #tpu.memory_space<vmem>>, vector<4x512xf32>,
    %cst_10 = arith.constant dense<0.000000e+00> : vector<4xf32>
    %12 = vector.multi_reduction <add>, %10, %cst_10 [1] : vector<4x512xf32> to vector<4xf32>
    %13 = vector.shape_cast %12 : vector<4xf32> to vector<4x1xf32>
    %14 = arith.mulf %10, %10 : vector<4x512xf32>
    %cst_11 = arith.constant dense<0.000000e+00> : vector<4xf32>
    %15 = vector.multi_reduction <add>, %14, %cst_11 [1] : vector<4x512xf32> to vector<4xf32>
    %16 = vector.shape_cast %15 : vector<4xf32> to vector<4x1xf32>
    %17 = tpu.concatenate %13, %16 in 1 : vector<4x1xf32>, vector<4x1xf32> -> vector<4x2xf32>
    %c0_12 = arith.constant 0 : index
    %c0_13 = arith.constant 0 : index
    %c0_14 = arith.constant 0 : index
    %18 = vector.load %arg6[%c0_12, %c0_13, %c0_14] : memref<1x4x2xf32, #tpu.memory_space<vmem>>, vector<1x4x2xf32>
    %19 = vector.shape_cast %18 : vector<1x4x2xf32> to vector<4x2xf32>
    %20 = vector.shape_cast %17 : vector<4x2xf32> to vector<1x4x2xf32>
    tpu.vector_store %arg6[%c0_12, %c0_13, %c0_14], %20 {strides = array<i32>} : memref<1x4x2xf32, #tpu.memory_space<vmem>>, vector<1x4x2xf32>,
    return
  }
  func.func @transform_0(%arg0: i32) -> (i32, i32) {
    %c0_i32 = arith.constant 0 : i32
    %c0_i32_0 = arith.constant 0 : i32
    return %c0_i32, %arg0 : i32, i32
  }
  func.func @transform_1(%arg0: i32) -> (i32, i32) {
    %c0_i32 = arith.constant 0 : i32
    %c0_i32_0 = arith.constant 0 : i32
    %c0_i32_1 = arith.constant 0 : i32
    return %c0_i32, %c0_i32_0 : i32, i32
  }
  func.func @transform_2(%arg0: i32) -> (i32, i32) {
    %c0_i32 = arith.constant 0 : i32
    %c0_i32_0 = arith.constant 0 : i32
    %c0_i32_1 = arith.constant 0 : i32
    return %c0_i32, %c0_i32_0 : i32, i32
  }
  func.func @transform_3(%arg0: i32) -> (i32, i32) {
    %c0_i32 = arith.constant 0 : i32
    %c0_i32_0 = arith.constant 0 : i32
    %c0_i32_1 = arith.constant 0 : i32
    return %c0_i32, %c0_i32_0 : i32, i32
  }
  func.func @transform_4(%arg0: i32) -> (i32, i32) {
    %c0_i32 = arith.constant 0 : i32
    %c0_i32_0 = arith.constant 0 : i32
    return %c0_i32, %arg0 : i32, i32
  }
  func.func @transform_5(%arg0: i32) -> (i32, i32, i32) {
    %c0_i32 = arith.constant 0 : i32
    %c0_i32_0 = arith.constant 0 : i32
    %c0_i32_1 = arith.constant 0 : i32
    return %arg0, %c0_i32, %c0_i32_0 : i32, i32, i32
  }
}

module attributes {stable_mosaic.version = 11 : i64} {
  func.func @_bn_add_relu_kernel(%arg0: i32, %arg1: memref<4x512xf32, #tpu.memory_space<vmem>>, %arg2: memref<4x512xf32, #tpu.memory_space<vmem>>, %arg3: memref<4x1xf32, #tpu.memory_space<vmem>>, %arg4: memref<4x1xf32, #tpu.memory_space<vmem>>, %arg5: memref<4x1xf32, #tpu.memory_space<vmem>>, %arg6: memref<4x1xf32, #tpu.memory_space<vmem>>, %arg7: memref<4x512xf32, #tpu.memory_space<vmem>>) attributes {dimension_semantics = [#tpu.dimension_semantics<parallel>], iteration_bounds = array<i64: 1>, scalar_prefetch = 0 : i64, scratch_operands = 0 : i64, tpu.core_type = #tpu.core_type<tc>, window_params = [{transform_indices = @transform_0, window_bounds = array<i64: 4, 512>}, {transform_indices = @transform_1, window_bounds = array<i64: 4, 512>}, {pipeline_mode = #tpu.pipeline_mode<synchronous>, transform_indices = @transform_2, window_bounds = array<i64: 4, 1>}, {pipeline_mode = #tpu.pipeline_mode<synchronous>, transform_indices = @transform_3, window_bounds = array<i64: 4, 1>}, {pipeline_mode = #tpu.pipeline_mode<synchronous>, transform_indices = @transform_4, window_bounds = array<i64: 4, 1>}, {pipeline_mode = #tpu.pipeline_mode<synchronous>, transform_indices = @transform_5, window_bounds = array<i64: 4, 1>}, {transform_indices = @transform_6, window_bounds = array<i64: 4, 512>}]} {
    %c0 = arith.constant 0 : index
    %c0_0 = arith.constant 0 : index
    %0 = vector.load %arg1[%c0, %c0_0] : memref<4x512xf32, #tpu.memory_space<vmem>>, vector<4x512xf32>
    %c0_1 = arith.constant 0 : index
    %c0_2 = arith.constant 0 : index
    %1 = vector.load %arg3[%c0_1, %c0_2] : memref<4x1xf32, #tpu.memory_space<vmem>>, vector<4x1xf32>
    %2 = vector.broadcast %1 : vector<4x1xf32> to vector<4x512xf32>
    %3 = arith.mulf %0, %2 : vector<4x512xf32>
    %c0_3 = arith.constant 0 : index
    %c0_4 = arith.constant 0 : index
    %4 = vector.load %arg4[%c0_3, %c0_4] : memref<4x1xf32, #tpu.memory_space<vmem>>, vector<4x1xf32>
    %5 = vector.broadcast %4 : vector<4x1xf32> to vector<4x512xf32>
    %6 = arith.addf %3, %5 : vector<4x512xf32>
    %c0_5 = arith.constant 0 : index
    %c0_6 = arith.constant 0 : index
    %7 = vector.load %arg2[%c0_5, %c0_6] : memref<4x512xf32, #tpu.memory_space<vmem>>, vector<4x512xf32>
    %c0_7 = arith.constant 0 : index
    %c0_8 = arith.constant 0 : index
    %8 = vector.load %arg5[%c0_7, %c0_8] : memref<4x1xf32, #tpu.memory_space<vmem>>, vector<4x1xf32>
    %9 = vector.broadcast %8 : vector<4x1xf32> to vector<4x512xf32>
    %10 = arith.mulf %7, %9 : vector<4x512xf32>
    %11 = arith.addf %6, %10 : vector<4x512xf32>
    %c0_9 = arith.constant 0 : index
    %c0_10 = arith.constant 0 : index
    %12 = vector.load %arg6[%c0_9, %c0_10] : memref<4x1xf32, #tpu.memory_space<vmem>>, vector<4x1xf32>
    %13 = vector.broadcast %12 : vector<4x1xf32> to vector<4x512xf32>
    %14 = arith.addf %11, %13 : vector<4x512xf32>
    %cst = arith.constant 0.000000e+00 : f32
    %15 = vector.broadcast %cst : f32 to vector<4x512xf32>
    %16 = arith.maximumf %14, %15 : vector<4x512xf32>
    %c0_11 = arith.constant 0 : index
    %c0_12 = arith.constant 0 : index
    %17 = vector.load %arg7[%c0_11, %c0_12] : memref<4x512xf32, #tpu.memory_space<vmem>>, vector<4x512xf32>
    tpu.vector_store %arg7[%c0_11, %c0_12], %16 {strides = array<i32>} : memref<4x512xf32, #tpu.memory_space<vmem>>, vector<4x512xf32>,
    return
  }
  func.func @transform_0(%arg0: i32) -> (i32, i32) {
    %c0_i32 = arith.constant 0 : i32
    %c0_i32_0 = arith.constant 0 : i32
    return %c0_i32, %arg0 : i32, i32
  }
  func.func @transform_1(%arg0: i32) -> (i32, i32) {
    %c0_i32 = arith.constant 0 : i32
    %c0_i32_0 = arith.constant 0 : i32
    return %c0_i32, %arg0 : i32, i32
  }
  func.func @transform_2(%arg0: i32) -> (i32, i32) {
    %c0_i32 = arith.constant 0 : i32
    %c0_i32_0 = arith.constant 0 : i32
    %c0_i32_1 = arith.constant 0 : i32
    return %c0_i32, %c0_i32_0 : i32, i32
  }
  func.func @transform_3(%arg0: i32) -> (i32, i32) {
    %c0_i32 = arith.constant 0 : i32
    %c0_i32_0 = arith.constant 0 : i32
    %c0_i32_1 = arith.constant 0 : i32
    return %c0_i32, %c0_i32_0 : i32, i32
  }
  func.func @transform_4(%arg0: i32) -> (i32, i32) {
    %c0_i32 = arith.constant 0 : i32
    %c0_i32_0 = arith.constant 0 : i32
    %c0_i32_1 = arith.constant 0 : i32
    return %c0_i32, %c0_i32_0 : i32, i32
  }
  func.func @transform_5(%arg0: i32) -> (i32, i32) {
    %c0_i32 = arith.constant 0 : i32
    %c0_i32_0 = arith.constant 0 : i32
    %c0_i32_1 = arith.constant 0 : i32
    return %c0_i32, %c0_i32_0 : i32, i32
  }
  func.func @transform_6(%arg0: i32) -> (i32, i32) {
    %c0_i32 = arith.constant 0 : i32
    %c0_i32_0 = arith.constant 0 : i32
    return %c0_i32, %arg0 : i32, i32
  }
}

</mosaic_0001>

<bundles_post_ra>
// kernel: resblock3d_forward.5
= control target key start
LH: loop header
LB: loop body
LE: loop exit
PB: predicated region body
PF: predicated region fallthrough
CT: control target
= control target key end

     0   :  { %s471_s12 = smov 0   ;;  %s499_s0 = inlined_call_operand.vmem [shape: bf16[4,2048], index: 0, kind: input, shape index: {}]   ;;  %s500_s1 = inlined_call_operand.vmem [shape: bf16[8,4], index: 1, kind: input, shape index: {}]   ;;  %s501_s2 = inlined_call_operand.vmem [shape: f32[8,2048], index: 2, kind: output, shape index: {0}]   ;;  %s502_s3 = inlined_call_operand.vmem [shape: f32[4,8,2], index: 3, kind: output, shape index: {1}]  }
   0x1 LB: > { %s477_s13 = sadd.s32 4294967295, %s447_s12   ;;  %p418_p0 = scmp.ge.s32.totalorder %s447_s12, 1  ;;  %s447_s12 = sphi %s471_s12, %s14_s12  }
   0x2   : > { %p141_p1 = scmp.lt.s32.totalorder %s447_s12, 5 }
   0x4   : > { %p142_p2 = pnand %p418_p0, %p141_p1 }
   0x5   : > { %s419_s14 = sshll.u32 (!%p142_p2), %s477_s13, 2  ;;  %v193_v0 = vlaneseq (!%p142_p2)  ;;  %v449_v1 = vmov (!%p142_p2), 1983009808   ;;  %v450_v3 = vmov (!%p142_p2), 0   ;;  %vm210_vm0 = vcmask (!%p142_p2), 1041408   ;;  %p181_p4 = scmp.lt.s32.totalorder (!%p142_p2), %s477_s13, 3 }
   0x6   : > { %145 = sbr.rel (%p142_p2) target bundleno = 392 (0x188), region = 28  ;;  %p170_p3 = scmp.lt.s32.totalorder (!%p142_p2), %s419_s14, 15  ;;  %v191_v2 = vunpack.c.l.s4 (!%p142_p2), %v449_v1  ;;  %255 = vmatprep.mubr.bf16.mxu0 (!%p142_p2), %v450_v3  ;;  %296 = vmatprep.mubr.bf16.mxu1 (!%p142_p2), %v450_v3  ;;  %v186_v15 = vld [vmem:[%s500_s1] sm:$0xf] (!%p142_p2)  ;;  %vm206_vm1 = vcmask (!%p142_p2), 31744   ;;  %vm323_vm2 = vcmask (!%p142_p2), 7168  }
   0x7   : > { %v194_v4 = vshrl.u32 (!%p142_p2), %v193_v0, 7  ;;  %vm325_vm3 = vcmask (!%p142_p2), 15360  }
   0x8   : > { %v192_v5 = vunpack.c.0.s8 (!%p142_p2), %v191_v2 }
   0xa   : > { %v195_v6 = vsub.s32 (!%p142_p2), %v192_v5, %v194_v4 }
   0xd   : > { %s504_s14 = smov (!%p170_p3, %s419_s14), 15  ;;  %s506_s13 = smov (!%p181_p4, %s477_s13), 3 }
   0xe   : > { %s420_s15 = sshll.u32 %s504_s14, 1  ;;  %s422_s21 = sshll.u32 %s504_s14, 3 }
   0xf   : > { %s173_s18 = scalar_lea.vmem %s499_s0, %s420_s15  ;;  %s179_s24 = scalar_lea.vmem %s501_s2, %s422_s21 }
  0x10   : > { %v187_v7 = vld [vmem:[%s173_s18] sm:$0xff]  ;;  %s423_s25 = sshll.u32 %s506_s13, 3 }
  0x11   : > { %v196_v8 = vrot.slane %v187_v7, %v195_v6  ;;  %v189_v9 = vcombine.high %v187_v7, %v187_v7  ;;  %s184_s28 = scalar_lea.vmem %s502_s3, %s423_s25 }
  0x13   : > { %v204_v10 = vcombine.high %v196_v8, %v196_v8  ;;  %v212_v11 = vsel %vm210_vm0, %v196_v8, 0  ;;  %v203_v12 = vrot.slane %v189_v9, %v195_v6 }
  0x15   : > { %424 = vmatprep.subr.msk.bf16.mxu0 %vm210_vm0, %v204_v10  ;;  %v205_v13 = vcombine.high %v203_v12, %v203_v12  ;;  %v218_v14 = vsel %vm210_vm0, %v203_v12, 0 }
  0x16   : > { %224 = vmatpush1.bf16.msra.mxu0 %v212_v11 }
  0x17   : > { %426 = vmatprep.subr.msk.bf16.mxu1 %vm210_vm0, %v205_v13 }
  0x18   : > { %265 = vmatpush1.bf16.msra.mxu1 %v218_v14 }
  0x19   : > { %425 = vmatmul.mubr.msk.bf16.vlgmr.msra.gmra.mrb[0].mxu0 %vm206_vm1, %v186_v15 }
  0x1b   : > { %427 = vmatmul.mubr.msk.bf16.vlgmr.msra.gmra.mrb[0].mxu1 %vm206_vm1, %v186_v15 }
  0xec   : > { %v257_v16 = vpop.f32.mrb[0].mxu0 }
  0xed   : > { %305 = vst [vmem:[%s179_s24] sm:$0xff] %v257_v16  ;;  %v314_v17 = vmul.f32 %v257_v16, %v257_v16  ;;  %v259_v18 = vpop.f32.mrb[1].mxu0 }
  0xee   : > { %306 = vst [vmem:[%s179_s24 + $0x8] sm:$0xff] %v259_v18  ;;  %v309_v19 = vadd.f32 %v259_v18, %v257_v16  ;;  %v315_v20 = vmul.f32 %v259_v18, %v259_v18  ;;  %v261_v21 = vpop.f32.mrb[2].mxu0  ;;  %v298_v22 = vpop.f32.mrb[0].mxu1 }
  0xef   : > { %307 = vst [vmem:[%s179_s24 + $0x10] sm:$0xff] %v298_v22  ;;  %v316_v23 = vmul.f32 %v298_v22, %v298_v22  ;;  %v262_v24 = vpop.f32.mrb[3].mxu0  ;;  %v300_v25 = vpop.f32.mrb[1].mxu1 }
  0xf0   : > { %308 = vst [vmem:[%s179_s24 + $0x18] sm:$0xff] %v300_v25  ;;  %v302_v26 = vpop.f32.mrb[2].mxu1  ;;  %v310_v27 = vadd.f32 %v309_v19, %v298_v22  ;;  %v318_v28 = vadd.f32 %v315_v20, %v314_v17  ;;  %v317_v31 = vmul.f32 %v300_v25, %v300_v25 }
  0xf1   : > { %v303_v29 = vpop.f32.mrb[3].mxu1 }
  0xf2   : > { %v311_v30 = vadd.f32 %v310_v27, %v300_v25  ;;  %v319_v32 = vadd.f32 %v318_v28, %v316_v23 }
  0xf4   : > { %312 = vadd.xlane.f32.xlu0 %v311_v30  ;;  %v320_v33 = vadd.f32 %v319_v32, %v317_v31 }
  0xf8   : > { %321 = vadd.xlane.f32.xlu0 %v320_v33 }
 0x181   : > { %v313_v34 = vpop.xlane.xlu0 %312 }
 0x185   : > { %v322_v35 = vpop.xlane.xlu0 %321 }
 0x186   : > { %v324_v36 = vsel %vm323_vm2, %v313_v34, %v322_v35 }
 0x187   : > { %326 = vst.msk [vmem:[%s184_s28] sm:$0xff] %vm325_vm3, %v324_v36 }
 0x188 PF: > { %s14_s12 = sadd.s32 1, %s447_s12  }
 0x189   : > { %p11_p5 = scmp.ge.s32.totalorder %s14_s12, 6  }
 0x18b   :  { %13 = sbr.rel (!%p11_p5) target bundleno = 1 (0x1), region = 70 }

// kernel: resblock3d_forward.6
= control target key start
LH: loop header
LB: loop body
LE: loop exit
PB: predicated region body
PF: predicated region fallthrough
CT: control target
= control target key end

     0   :  { %s330_s12 = smov 0   ;;  %s353_s0 = inlined_call_operand.vmem [shape: f32[8,2048], index: 0, kind: input, shape index: {}]   ;;  %s354_s1 = inlined_call_operand.vmem [shape: f32[8,1], index: 1, kind: input, shape index: {}]   ;;  %s355_s2 = inlined_call_operand.vmem [shape: f32[8,1], index: 2, kind: input, shape index: {}]   ;;  %s356_s3 = inlined_call_operand.vmem [shape: bf16[8,2048], index: 3, kind: output, shape index: {}]  }
   0x1 LB: > { %s276_s13 = sadd.s32 4294967295, %s307_s12   ;;  %p280_p0 = scmp.ge.s32.totalorder %s307_s12, 1  ;;  %s307_s12 = sphi %s330_s12, %s13_s12  }
   0x2   : > { %p138_p1 = scmp.lt.s32.totalorder %s307_s12, 5 }
   0x4   : > { %p139_p2 = pnand %p280_p0, %p138_p1 }
   0x5   : > { %v178_v0 = vld [vmem:[%s354_s1] sm:$0xff] (!%p139_p2)  ;;  %v309_v1 = vmov (!%p139_p2), 0   ;;  %s281_s18 = sshll.u32 (!%p139_p2), %s276_s13, 2 }
   0x6   : > { %142 = sbr.rel (%p139_p2) target bundleno = 146 (0x92), region = 32  ;;  %300 = vset.pattern.permute.xlu0 (!%p139_p2), %v309_v1  ;;  %v188_v2 = vld [vmem:[%s355_s2] sm:$0xff] (!%p139_p2)  ;;  %p163_p3 = scmp.lt.s32.totalorder (!%p139_p2), %s281_s18, 15 }
   0x7   : > { %181 = vperm.xlu0 (!%p139_p2), %300, %v178_v0  }
   0xb   : > { %191 = vperm.xlu0 (!%p139_p2), %300, %v188_v2  }
   0xd   : > { %s358_s18 = smov (!%p163_p3, %s281_s18), 15 }
   0xe   : > { %s282_s19 = sshll.u32 %s358_s18, 3  ;;  %s284_s23 = sshll.u32 %s358_s18, 2 }
   0xf   : > { %s166_s22 = scalar_lea.vmem %s353_s0, %s282_s19  ;;  %s172_s26 = scalar_lea.vmem %s356_s3, %s284_s23 }
  0x10   : > { %v174_v3 = vld [vmem:[%s166_s22] sm:$0xff]  ;;  %v175_v5 = vld [vmem:[%s166_s22 + $0x8] sm:$0xff]  ;;  %v176_v6 = vld [vmem:[%s166_s22 + $0x10] sm:$0xff] }
  0x11   : > { %v177_v7 = vld [vmem:[%s166_s22 + $0x18] sm:$0xff] }
  0x86   : > { %v182_v4 = vpop.permute.xlu0 %181 }
  0x87   : > { %v184_v8 = vmul.f32 %v182_v4, %v174_v3  ;;  %v185_v9 = vmul.f32 %v182_v4, %v175_v5  ;;  %v186_v10 = vmul.f32 %v182_v4, %v176_v6  ;;  %v187_v11 = vmul.f32 %v182_v4, %v177_v7 }
  0x8a   : > { %v192_v12 = vpop.permute.xlu0 %191 }
  0x8b   : > { %v194_v13 = vadd.f32 %v192_v12, %v184_v8  ;;  %v195_v14 = vadd.f32 %v192_v12, %v185_v9  ;;  %v196_v15 = vadd.f32 %v192_v12, %v186_v10  ;;  %v197_v16 = vadd.f32 %v192_v12, %v187_v11 }
  0x8d   : > { %v198_v17 = vmax.f32 %v194_v13, 0.0  ;;  %v199_v18 = vmax.f32 %v195_v14, 0.0  ;;  %v200_v19 = vmax.f32 %v196_v15, 0.0  ;;  %v201_v20 = vmax.f32 %v197_v16, 0.0 }
  0x8f   : > { %v289_v21 = vpack.c.bf16 %v199_v18, %v198_v17  ;;  %v290_v22 = vpack.c.bf16 %v201_v20, %v200_v19 }
  0x91   : > { %218 = vst [vmem:[%s172_s26] sm:$0xff] %v289_v21  ;;  %219 = vst [vmem:[%s172_s26 + $0x8] sm:$0xff] %v290_v22 }
  0x92 PF: > { %s13_s12 = sadd.s32 1, %s307_s12  }
  0x93   : > { %p10_p4 = scmp.ge.s32.totalorder %s13_s12, 6  }
  0x95   :  { %12 = sbr.rel (!%p10_p4) target bundleno = 1 (0x1), region = 62 }

// kernel: resblock3d_forward.8
= control target key start
LH: loop header
LB: loop body
LE: loop exit
PB: predicated region body
PF: predicated region fallthrough
CT: control target
= control target key end

     0   :  { %v244_v0 = vmov 0   ;;  %v245_v3 = vmov 0.0   ;;  %vm48_vm0 = vcmask 64512   ;;  %vm204_vm1 = vcmask 1043456   ;;  %s314_s1 = inlined_call_operand.vmem [shape: f32[8,1], index: 1, kind: input, shape index: {}]   ;;  %s315_s2 = inlined_call_operand.vmem [shape: f32[8,1], index: 2, kind: input, shape index: {}]   ;;  %s316_s0 = inlined_call_operand.vmem [shape: f32[8,512], index: 0, kind: input, shape index: {}]   ;;  %s317_s3 = inlined_call_operand.vmem [shape: f32[4,8], index: 3, kind: input, shape index: {}]   ;;  %s318_s4 = inlined_call_operand.vmem [shape: f32[4,512], index: 4, kind: output, shape index: {0}]   ;;  %s319_s5 = inlined_call_operand.vmem [shape: f32[1,4,2], index: 5, kind: output, shape index: {1}]  }
   0x1   :  { %243 = vset.pattern.permute.xlu0 %v244_v0  ;;  %v23_v1 = vld [vmem:[%s314_s1] sm:$0xff]  ;;  %116 = vmatprep.mubr.f32.mxu0 %v245_v3  ;;  %v20_v4 = vld [vmem:[%s316_s0 + $0x8] sm:$0xff]  ;;  %v22_v6 = vld [vmem:[%s316_s0 + $0x18] sm:$0xff]  ;;  %vm227_vm2 = vcmask 7168   ;;  %vm229_vm3 = vcmask 11264  }
   0x2   :  { %26 = vperm.xlu0 %243, %v23_v1   ;;  %v33_v2 = vld [vmem:[%s315_s2] sm:$0xff]  ;;  %187 = vmatprep.mubr.f32.mxu1 %v245_v3  ;;  %v21_v8 = vld [vmem:[%s316_s0 + $0x10] sm:$0xff] }
   0x3   :  { %v19_v7 = vld [vmem:[%s316_s0] sm:$0xff] }
   0x4   :  { %v47_v22 = vld [vmem:[%s317_s3] sm:$0xf] }
   0x6   :  { %36 = vperm.xlu0 %243, %v33_v2  }
  0x81   :  { %v27_v5 = vpop.permute.xlu0 %26 }
  0x82   :  { %v30_v9 = vmul.f32 %v27_v5, %v20_v4  ;;  %v32_v10 = vmul.f32 %v27_v5, %v22_v6  ;;  %v29_v11 = vmul.f32 %v27_v5, %v19_v7  ;;  %v31_v12 = vmul.f32 %v27_v5, %v21_v8 }
  0x85   :  { %v37_v13 = vpop.permute.xlu0 %36 }
  0x86   :  { %v40_v14 = vadd.f32 %v37_v13, %v30_v9  ;;  %v42_v15 = vadd.f32 %v37_v13, %v32_v10  ;;  %v39_v16 = vadd.f32 %v37_v13, %v29_v11  ;;  %v41_v17 = vadd.f32 %v37_v13, %v31_v12 }
  0x88   :  { %v44_v18 = vmax.f32 %v40_v14, 0.0  ;;  %v46_v19 = vmax.f32 %v42_v15, 0.0  ;;  %v43_v20 = vmax.f32 %v39_v16, 0.0  ;;  %v45_v21 = vmax.f32 %v41_v17, 0.0 }
  0x8a   :  { %52 = vmatprep.subr.mxu0 %v44_v18  ;;  %123 = vmatprep.subr.mxu1 %v46_v19 }
  0x8b   :  { %53 = vmatpush1.msra.mxu0 %v43_v20  ;;  %124 = vmatpush1.msra.mxu1 %v45_v21 }
  0x8c   :  { %239 = vmatmul.mubr.msk.f32.vlgmr.msra.gmra.mrb[0].mxu0 %vm48_vm0, %v47_v22  ;;  %240 = vmatmul.mubr.msk.f32.vlgmr.msra.gmra.mrb[0].mxu1 %vm48_vm0, %v47_v22 }
 0x15f   :  { %v118_v23 = vpop.f32.mrb[0].mxu0  ;;  %v189_v24 = vpop.f32.mrb[0].mxu1 }
 0x160   :  { %v205_v25 = vsel %vm204_vm1, %v118_v23, 0.0  ;;  %v214_v26 = vmul.f32 %v118_v23, %v118_v23  ;;  %v120_v27 = vpop.f32.mrb[1].mxu0  ;;  %v216_v28 = vmul.f32 %v189_v24, %v189_v24  ;;  %v191_v29 = vpop.f32.mrb[1].mxu1  ;;  %v208_v30 = vsel %vm204_vm1, %v189_v24, 0.0 }
 0x161   :  { %v198_v31 = vcombine.low %v118_v23, %v120_v27  ;;  %v206_v32 = vsel %vm204_vm1, %v120_v27, 0.0  ;;  %v215_v33 = vmul.f32 %v120_v27, %v120_v27  ;;  %v199_v34 = vcombine.low %v189_v24, %v191_v29 }
 0x162   :  { %v218_v35 = vsel %vm204_vm1, %v214_v26, 0.0  ;;  %v207_v36 = vadd.f32 %v206_v32, %v205_v25  ;;  %v217_v38 = vmul.f32 %v191_v29, %v191_v29  ;;  %v221_v39 = vsel %vm204_vm1, %v216_v28, 0.0 }
 0x163   :  { %202 = vst [vmem:[%s318_s4] sm:$0xff] %v198_v31  ;;  %v219_v37 = vsel %vm204_vm1, %v215_v33, 0.0  ;;  %203 = vst [vmem:[%s318_s4 + $0x8] sm:$0xff] %v199_v34  ;;  %v210_v42 = vsel %vm204_vm1, %v191_v29, 0.0 }
 0x164   :  { %v220_v40 = vadd.f32 %v219_v37, %v218_v35  ;;  %v209_v41 = vadd.f32 %v208_v30, %v207_v36  ;;  %v223_v45 = vsel %vm204_vm1, %v217_v38, 0.0 }
 0x166   :  { %v211_v43 = vadd.f32 %v210_v42, %v209_v41  ;;  %v222_v44 = vadd.f32 %v221_v39, %v220_v40 }
 0x168   :  { %212 = vadd.xlane.f32.xlu1 %v211_v43  ;;  %v224_v46 = vadd.f32 %v223_v45, %v222_v44 }
 0x16c   :  { %225 = vadd.xlane.f32.xlu1 %v224_v46 }
 0x1f5   :  { %v213_v47 = vpop.xlane.xlu1 %212 }
 0x1f9   :  { %v226_v48 = vpop.xlane.xlu1 %225 }
 0x1fa   :  { %v228_v49 = vsel %vm227_vm2, %v213_v47, %v226_v48 }
 0x1fb   :  { %230 = vst.msk [vmem:[%s319_s5] sm:$0xf] %vm229_vm3, %v228_v49 }

// kernel: resblock3d_forward.7
= control target key start
LH: loop header
LB: loop body
LE: loop exit
PB: predicated region body
PF: predicated region fallthrough
CT: control target
= control target key end

     0   :  { %vm353_vm0 = vcmask 719872   ;;  %vm357_vm1 = vcmask 1043456   ;;  %vm643_vm2 = vcmask 1045504   ;;  %vm639_vm3 = vcmask 883712   ;;  %s1339_s0 = inlined_call_operand.vmem [shape: bf16[216,512], index: 0, kind: input, shape index: {}]   ;;  %s1340_s1 = inlined_call_operand.vmem [shape: bf16[8,216], index: 1, kind: input, shape index: {}]   ;;  %s1341_s2 = inlined_call_operand.vmem [shape: bf16[108,512], index: 2, kind: input, shape index: {}]   ;;  %s1342_s3 = inlined_call_operand.vmem [shape: bf16[4,108], index: 3, kind: input, shape index: {}]   ;;  %s1343_s4 = inlined_call_operand.vmem [shape: f32[8,512], index: 4, kind: output, shape index: {0}]   ;;  %s1344_s5 = inlined_call_operand.vmem [shape: f32[4,512], index: 5, kind: output, shape index: {1}]   ;;  %s1345_s6 = inlined_call_operand.vmem [shape: f32[1,8,2], index: 6, kind: output, shape index: {2}]   ;;  %s1346_s7 = inlined_call_operand.vmem [shape: f32[1,4,2], index: 7, kind: output, shape index: {3}]  }
   0x1   :  { %v884_v0 = vld [vmem:[%s1339_s0 + $0x4] ss:$16 sps:$4 sm:$0xff]   ;;  %v886_v1 = vld [vmem:[%s1339_s0 + $0xc] ss:$16 sps:$4 sm:$0xff]   ;;  %v888_v2 = vld [vmem:[%s1339_s0] ss:$16 sps:$4 sm:$0xff]  }
   0x2   :  { %370 = vmatprep.subr.bf16.mxu0 %v884_v0  ;;  %v889_v3 = vld [vmem:[%s1339_s0 + $0x8] ss:$16 sps:$4 sm:$0xff]   ;;  %411 = vmatprep.subr.bf16.mxu1 %v886_v1  ;;  %v890_v4 = vld [vmem:[%s1339_s0 + $0x24] ss:$16 sps:$4 sm:$0xff]   ;;  %v892_v5 = vld [vmem:[%s1339_s0 + $0x2c] ss:$16 sps:$4 sm:$0xff]  }
   0x3   :  { %371 = vmatpush1.bf16.msra.mxu0 %v888_v2  ;;  %412 = vmatpush1.bf16.msra.mxu1 %v889_v3  ;;  %v894_v6 = vld [vmem:[%s1339_s0 + $0x20] ss:$16 sps:$4 sm:$0xff]   ;;  %v895_v7 = vld [vmem:[%s1339_s0 + $0x28] ss:$16 sps:$4 sm:$0xff]   ;;  %v896_v8 = vld [vmem:[%s1339_s0 + $0x44] ss:$16 sps:$4 sm:$0xff]  }
   0x4   :  { %372 = vmatprep.subr.bf16.mxu0 %v890_v4  ;;  %413 = vmatprep.subr.bf16.mxu1 %v892_v5  ;;  %v898_v9 = vld [vmem:[%s1339_s0 + $0x4c] ss:$16 sps:$4 sm:$0xff]   ;;  %v900_v10 = vld [vmem:[%s1339_s0 + $0x40] ss:$16 sps:$4 sm:$0xff]   ;;  %v901_v11 = vld [vmem:[%s1339_s0 + $0x48] ss:$16 sps:$4 sm:$0xff]  }
   0x5   :  { %v902_v12 = vld [vmem:[%s1339_s0 + $0x64] ss:$16 sps:$4 sm:$0xff]   ;;  %v904_v13 = vld [vmem:[%s1339_s0 + $0x6c] ss:$16 sps:$4 sm:$0xff]   ;;  %v906_v14 = vld [vmem:[%s1339_s0 + $0x60] ss:$16 sps:$4 sm:$0xff]  }
   0x6   :  { %v907_v15 = vld [vmem:[%s1339_s0 + $0x68] ss:$16 sps:$4 sm:$0xff]   ;;  %v908_v16 = vld [vmem:[%s1339_s0 + $0x84] ss:$16 sps:$4 sm:$0xff]   ;;  %v910_v17 = vld [vmem:[%s1339_s0 + $0x8c] ss:$16 sps:$4 sm:$0xff]  }
   0x7   :  { %373 = vmatpush1.bf16.msra.mxu0 %v894_v6  ;;  %414 = vmatpush1.bf16.msra.mxu1 %v895_v7  ;;  %v912_v18 = vld [vmem:[%s1339_s0 + $0x80] ss:$16 sps:$4 sm:$0xff]   ;;  %v913_v19 = vld [vmem:[%s1339_s0 + $0x88] ss:$16 sps:$4 sm:$0xff]   ;;  %v914_v20 = vld [vmem:[%s1339_s0 + $0xa4] ss:$16 sps:$4 sm:$0xff]  }
   0x8   :  { %374 = vmatprep.subr.bf16.mxu0 %v896_v8  ;;  %415 = vmatprep.subr.bf16.mxu1 %v898_v9  ;;  %v916_v21 = vld [vmem:[%s1339_s0 + $0xac] ss:$16 sps:$4 sm:$0xff]   ;;  %v918_v22 = vld [vmem:[%s1339_s0 + $0xa0] ss:$16 sps:$4 sm:$0xff]   ;;  %v919_v23 = vld [vmem:[%s1339_s0 + $0xa8] ss:$16 sps:$4 sm:$0xff]  }
   0x9   :  { %v920_v24 = vld [vmem:[%s1339_s0 + $0xc4] ss:$16 sps:$4 sm:$0xff]   ;;  %v922_v25 = vld [vmem:[%s1339_s0 + $0xcc] ss:$16 sps:$4 sm:$0xff]   ;;  %v924_v26 = vld [vmem:[%s1339_s0 + $0xc0] ss:$16 sps:$4 sm:$0xff]  }
   0xa   :  { %v925_v27 = vld [vmem:[%s1339_s0 + $0xc8] ss:$16 sps:$4 sm:$0xff]   ;;  %v926_v28 = vld [vmem:[%s1339_s0 + $0xe4] ss:$16 sps:$4 sm:$0xff]   ;;  %v928_v29 = vld [vmem:[%s1339_s0 + $0xec] ss:$16 sps:$4 sm:$0xff]  }
   0xb   :  { %375 = vmatpush1.bf16.msra.mxu0 %v900_v10  ;;  %416 = vmatpush1.bf16.msra.mxu1 %v901_v11  ;;  %v930_v30 = vld [vmem:[%s1339_s0 + $0xe0] ss:$16 sps:$4 sm:$0xff]   ;;  %v931_v31 = vld [vmem:[%s1339_s0 + $0xe8] ss:$16 sps:$4 sm:$0xff]   ;;  %v932_v32 = vld [vmem:[%s1339_s0 + $0x104] ss:$16 sps:$4 sm:$0xff]  }
   0xc   :  { %376 = vmatprep.subr.bf16.mxu0 %v902_v12  ;;  %417 = vmatprep.subr.bf16.mxu1 %v904_v13  ;;  %v934_v33 = vld [vmem:[%s1339_s0 + $0x10c] ss:$16 sps:$4 sm:$0xff]   ;;  %v936_v34 = vld [vmem:[%s1339_s0 + $0x100] ss:$16 sps:$4 sm:$0xff]   ;;  %v937_v35 = vld [vmem:[%s1339_s0 + $0x108] ss:$16 sps:$4 sm:$0xff]  }
   0xd   :  { %v938_v36 = vld [vmem:[%s1339_s0 + $0x124] ss:$16 sps:$4 sm:$0xff]   ;;  %v940_v37 = vld [vmem:[%s1339_s0 + $0x12c] ss:$16 sps:$4 sm:$0xff]   ;;  %v942_v38 = vld [vmem:[%s1339_s0 + $0x120] ss:$16 sps:$4 sm:$0xff]  }
   0xe   :  { %v22_v39 = vld [vmem:[%s1340_s1] sm:$0xff]  ;;  %v943_v40 = vld [vmem:[%s1339_s0 + $0x128] ss:$16 sps:$4 sm:$0xff]   ;;  %v946_v42 = vld [vmem:[%s1339_s0 + $0x14c] ss:$16 sps:$4 sm:$0xff]   ;;  %v1010_v9 = vmov 0  }
   0xf   :  { %377 = vmatpush1.bf16.msra.mxu0 %v906_v14  ;;  %418 = vmatpush1.bf16.msra.mxu1 %v907_v15  ;;  %v944_v41 = vld [vmem:[%s1339_s0 + $0x144] ss:$16 sps:$4 sm:$0xff]   ;;  %v790_v43 = vcombine.high %v22_v39, %v22_v39  ;;  %v948_v44 = vld [vmem:[%s1339_s0 + $0x140] ss:$16 sps:$4 sm:$0xff]   ;;  %v949_v45 = vld [vmem:[%s1339_s0 + $0x148] ss:$16 sps:$4 sm:$0xff]   ;;  %v789_v0 = vcombine.low %v22_v39, %v22_v39 }
  0x10   :  { %378 = vmatprep.subr.bf16.mxu0 %v908_v16  ;;  %419 = vmatprep.subr.bf16.mxu1 %v910_v17  ;;  %v950_v46 = vld [vmem:[%s1339_s0 + $0x164] ss:$16 sps:$4 sm:$0xff]   ;;  %v952_v47 = vld [vmem:[%s1339_s0 + $0x16c] ss:$16 sps:$4 sm:$0xff]   ;;  %v954_v48 = vld [vmem:[%s1339_s0 + $0x160] ss:$16 sps:$4 sm:$0xff]  }
  0x11   :  { %848 = vmatprep.mubr.msk.bf16.mxu0 %vm353_vm0, %v790_v43  ;;  %850 = vmatprep.mubr.msk.bf16.mxu1 %vm353_vm0, %v790_v43  ;;  %v955_v49 = vld [vmem:[%s1339_s0 + $0x168] ss:$16 sps:$4 sm:$0xff]   ;;  %v956_v50 = vld [vmem:[%s1339_s0 + $0x184] ss:$16 sps:$4 sm:$0xff]   ;;  %v958_v51 = vld [vmem:[%s1339_s0 + $0x18c] ss:$16 sps:$4 sm:$0xff]  }
  0x12   :  { %v75_v52 = vld [vmem:[%s1339_s0 + $0x1a0] sm:$0xff]  ;;  %v76_v53 = vld [vmem:[%s1339_s0 + $0x1a8] sm:$0xff]  ;;  %vm470_vm4 = vcmask 7168   ;;  %vm472_vm5 = vcmask 15360   ;;  %vm771_vm6 = vcmask 11264  }
  0x13   :  { %379 = vmatpush1.bf16.msra.mxu0 %v912_v18  ;;  %420 = vmatpush1.bf16.msra.mxu1 %v913_v19  ;;  %v960_v54 = vld [vmem:[%s1339_s0 + $0x180] ss:$16 sps:$4 sm:$0xff]   ;;  %v961_v55 = vld [vmem:[%s1339_s0 + $0x188] ss:$16 sps:$4 sm:$0xff]   ;;  %v844_v56 = vcombine.high %v75_v52, %v75_v52  ;;  %v846_v57 = vcombine.high %v76_v53, %v76_v53  ;;  %v843_v58 = vcombine.low %v75_v52, %v75_v52  ;;  %v970_v60 = vld [vmem:[%s1341_s2 + $0x4] ss:$16 sps:$4 sm:$0xff]  }
  0x14   :  { %380 = vmatprep.subr.bf16.mxu0 %v914_v20  ;;  %421 = vmatprep.subr.bf16.mxu1 %v916_v21  ;;  %v845_v59 = vcombine.low %v76_v53, %v76_v53  ;;  %v973_v63 = vld [vmem:[%s1341_s2 + $0xc] ss:$16 sps:$4 sm:$0xff]   ;;  %v968_v1 = vld [vmem:[%s1341_s2] ss:$16 sps:$4 sm:$0xff]   ;;  %v971_v2 = vld [vmem:[%s1341_s2 + $0x8] ss:$16 sps:$4 sm:$0xff]  }
  0x15   :  { %v359_v61 = vsel %vm357_vm1, %v843_v58, 0  ;;  %v976_v3 = vld [vmem:[%s1341_s2 + $0x24] ss:$16 sps:$4 sm:$0xff]   ;;  %v979_v4 = vld [vmem:[%s1341_s2 + $0x2c] ss:$16 sps:$4 sm:$0xff]  }
  0x16   :  { %v365_v62 = vsel %vm357_vm1, %v845_v59, 0  ;;  %v974_v5 = vld [vmem:[%s1341_s2 + $0x20] ss:$16 sps:$4 sm:$0xff]   ;;  %v977_v6 = vld [vmem:[%s1341_s2 + $0x28] ss:$16 sps:$4 sm:$0xff]  }
  0x17   :  { %381 = vmatpush1.bf16.msra.mxu0 %v918_v22  ;;  %422 = vmatpush1.bf16.msra.mxu1 %v919_v23  ;;  %v982_v7 = vld [vmem:[%s1341_s2 + $0x44] ss:$16 sps:$4 sm:$0xff]   ;;  %v985_v8 = vld [vmem:[%s1341_s2 + $0x4c] ss:$16 sps:$4 sm:$0xff]   ;;  %v980_v10 = vld [vmem:[%s1341_s2 + $0x40] ss:$16 sps:$4 sm:$0xff]  }
  0x18   :  { %382 = vmatprep.subr.bf16.mxu0 %v920_v24  ;;  %423 = vmatprep.subr.bf16.mxu1 %v922_v25  ;;  %v983_v11 = vld [vmem:[%s1341_s2 + $0x48] ss:$16 sps:$4 sm:$0xff]   ;;  %v988_v12 = vld [vmem:[%s1341_s2 + $0x64] ss:$16 sps:$4 sm:$0xff]   ;;  %v991_v13 = vld [vmem:[%s1341_s2 + $0x6c] ss:$16 sps:$4 sm:$0xff]  }
  0x19   :  { %v986_v14 = vld [vmem:[%s1341_s2 + $0x60] ss:$16 sps:$4 sm:$0xff]   ;;  %v989_v15 = vld [vmem:[%s1341_s2 + $0x68] ss:$16 sps:$4 sm:$0xff]   ;;  %v994_v16 = vld [vmem:[%s1341_s2 + $0x84] ss:$16 sps:$4 sm:$0xff]  }
  0x1a   :  { %v997_v17 = vld [vmem:[%s1341_s2 + $0x8c] ss:$16 sps:$4 sm:$0xff]   ;;  %v992_v18 = vld [vmem:[%s1341_s2 + $0x80] ss:$16 sps:$4 sm:$0xff]   ;;  %v995_v19 = vld [vmem:[%s1341_s2 + $0x88] ss:$16 sps:$4 sm:$0xff]  }
  0x1b   :  { %383 = vmatpush1.bf16.msra.mxu0 %v924_v26  ;;  %424 = vmatpush1.bf16.msra.mxu1 %v925_v27  ;;  %v1000_v20 = vld [vmem:[%s1341_s2 + $0xa4] ss:$16 sps:$4 sm:$0xff]   ;;  %v1003_v21 = vld [vmem:[%s1341_s2 + $0xac] ss:$16 sps:$4 sm:$0xff]   ;;  %v998_v22 = vld [vmem:[%s1341_s2 + $0xa0] ss:$16 sps:$4 sm:$0xff]  }
  0x1c   :  { %384 = vmatprep.subr.bf16.mxu0 %v926_v28  ;;  %425 = vmatprep.subr.bf16.mxu1 %v928_v29  ;;  %v1001_v23 = vld [vmem:[%s1341_s2 + $0xa8] ss:$16 sps:$4 sm:$0xff]   ;;  %v1004_v24 = vld [vmem:[%s1341_s2 + $0xc4] ss:$16 sps:$4 sm:$0x3f]  }
  0x1d   :  { %v1006_v25 = vld [vmem:[%s1341_s2 + $0xcc] ss:$16 sps:$4 sm:$0x3f]   ;;  %v1008_v26 = vld [vmem:[%s1341_s2 + $0xc0] ss:$16 sps:$4 sm:$0x3f]  }
  0x1e   :  { %v1009_v27 = vld [vmem:[%s1341_s2 + $0xc8] ss:$16 sps:$4 sm:$0x3f]   ;;  %v645_v28 = vsel %vm643_vm2, %v1008_v26, 0 }
  0x1f   :  { %385 = vmatpush1.bf16.msra.mxu0 %v930_v30  ;;  %426 = vmatpush1.bf16.msra.mxu1 %v931_v31  ;;  %v651_v29 = vsel %vm643_vm2, %v1009_v27, 0  ;;  %v474_v30 = vld [vmem:[%s1342_s3] sm:$0x3] }
  0x20   :  { %386 = vmatprep.subr.bf16.mxu0 %v932_v32  ;;  %427 = vmatprep.subr.bf16.mxu1 %v934_v33 }
  0x23   :  { %387 = vmatpush1.bf16.msra.mxu0 %v936_v34  ;;  %428 = vmatpush1.bf16.msra.mxu1 %v937_v35 }
  0x24   :  { %388 = vmatprep.subr.bf16.mxu0 %v938_v36  ;;  %429 = vmatprep.subr.bf16.mxu1 %v940_v37 }
  0x27   :  { %389 = vmatpush1.bf16.msra.mxu0 %v942_v38  ;;  %430 = vmatpush1.bf16.msra.mxu1 %v943_v40 }
  0x28   :  { %390 = vmatprep.subr.bf16.mxu0 %v944_v41  ;;  %431 = vmatprep.subr.bf16.mxu1 %v946_v42 }
  0x2b   :  { %391 = vmatpush1.bf16.msra.mxu0 %v948_v44  ;;  %432 = vmatpush1.bf16.msra.mxu1 %v949_v45 }
  0x2c   :  { %392 = vmatprep.subr.bf16.mxu0 %v950_v46  ;;  %433 = vmatprep.subr.bf16.mxu1 %v952_v47 }
  0x2f   :  { %393 = vmatpush1.bf16.msra.mxu0 %v954_v48  ;;  %434 = vmatpush1.bf16.msra.mxu1 %v955_v49 }
  0x30   :  { %394 = vmatprep.subr.bf16.mxu0 %v956_v50  ;;  %435 = vmatprep.subr.bf16.mxu1 %v958_v51 }
  0x33   :  { %395 = vmatpush1.bf16.msra.mxu0 %v960_v54  ;;  %436 = vmatpush1.bf16.msra.mxu1 %v961_v55 }
  0x34   :  { %847 = vmatprep.subr.msk.bf16.mxu0 %vm357_vm1, %v844_v56  ;;  %849 = vmatprep.subr.msk.bf16.mxu1 %vm357_vm1, %v846_v57 }
  0x37   :  { %397 = vmatpush1.bf16.msra.mxu0 %v359_v61  ;;  %438 = vmatpush1.bf16.msra.mxu1 %v365_v62 }
  0x38   :  { %656 = vmatprep.subr.bf16.mxu0 %v970_v60  ;;  %697 = vmatprep.subr.bf16.mxu1 %v973_v63 }
  0x3a   :  { %403 = vmatmul.mubr.bf16.vlgmr.msra.gmra.mrb[0].mxu0 %v789_v0  ;;  %444 = vmatmul.mubr.bf16.vlgmr.msra.gmra.mrb[0].mxu1 %v789_v0 }
  0x3b   :  { %657 = vmatpush1.bf16.msra.mxu0 %v968_v1  ;;  %698 = vmatpush1.bf16.msra.mxu1 %v971_v2 }
  0x3c   :  { %658 = vmatprep.subr.bf16.mxu0 %v976_v3  ;;  %699 = vmatprep.subr.bf16.mxu1 %v979_v4 }
  0x3d   :  { %688 = vmatprep.mubr.bf16.mxu0 %v1010_v9  ;;  %729 = vmatprep.mubr.bf16.mxu1 %v1010_v9 }
  0x3f   :  { %659 = vmatpush1.bf16.msra.mxu0 %v974_v5  ;;  %700 = vmatpush1.bf16.msra.mxu1 %v977_v6 }
  0x40   :  { %660 = vmatprep.subr.bf16.mxu0 %v982_v7  ;;  %701 = vmatprep.subr.bf16.mxu1 %v985_v8 }
  0x43   :  { %661 = vmatpush1.bf16.msra.mxu0 %v980_v10  ;;  %702 = vmatpush1.bf16.msra.mxu1 %v983_v11 }
  0x44   :  { %662 = vmatprep.subr.bf16.mxu0 %v988_v12  ;;  %703 = vmatprep.subr.bf16.mxu1 %v991_v13 }
  0x47   :  { %663 = vmatpush1.bf16.msra.mxu0 %v986_v14  ;;  %704 = vmatpush1.bf16.msra.mxu1 %v989_v15 }
  0x48   :  { %664 = vmatprep.subr.bf16.mxu0 %v994_v16  ;;  %705 = vmatprep.subr.bf16.mxu1 %v997_v17 }
  0x4b   :  { %665 = vmatpush1.bf16.msra.mxu0 %v992_v18  ;;  %706 = vmatpush1.bf16.msra.mxu1 %v995_v19 }
  0x4c   :  { %666 = vmatprep.subr.bf16.mxu0 %v1000_v20  ;;  %707 = vmatprep.subr.bf16.mxu1 %v1003_v21 }
  0x4f   :  { %667 = vmatpush1.bf16.msra.mxu0 %v998_v22  ;;  %708 = vmatpush1.bf16.msra.mxu1 %v1001_v23 }
  0x50   :  { %879 = vmatprep.subr.msk.bf16.mxu0 %vm643_vm2, %v1004_v24  ;;  %881 = vmatprep.subr.msk.bf16.mxu1 %vm643_vm2, %v1006_v25 }
  0x53   :  { %669 = vmatpush1.bf16.msra.mxu0 %v645_v28  ;;  %710 = vmatpush1.bf16.msra.mxu1 %v651_v29 }
  0x56   :  { %880 = vmatmul.mubr.msk.bf16.vlgmr.msra.gmra.mrb[4].mxu0 %vm639_vm3, %v474_v30  ;;  %882 = vmatmul.mubr.msk.bf16.vlgmr.msra.gmra.mrb[4].mxu1 %vm639_vm3, %v474_v30 }
 0x10d   :  { %v404_v31 = vpop.f32.mrb[0].mxu0  ;;  %v445_v32 = vpop.f32.mrb[0].mxu1 }
 0x10e   :  { %452 = vst [vmem:[%s1343_s4] sm:$0xff] %v404_v31  ;;  %v461_v33 = vmul.f32 %v404_v31, %v404_v31  ;;  %v406_v34 = vpop.f32.mrb[1].mxu0  ;;  %454 = vst [vmem:[%s1343_s4 + $0x10] sm:$0xff] %v445_v32  ;;  %v447_v35 = vpop.f32.mrb[1].mxu1  ;;  %v463_v38 = vmul.f32 %v445_v32, %v445_v32 }
 0x10f   :  { %453 = vst [vmem:[%s1343_s4 + $0x8] sm:$0xff] %v406_v34  ;;  %v456_v36 = vadd.f32 %v406_v34, %v404_v31  ;;  %v462_v37 = vmul.f32 %v406_v34, %v406_v34  ;;  %v408_v39 = vpop.f32.mrb[2].mxu0  ;;  %455 = vst [vmem:[%s1343_s4 + $0x18] sm:$0xff] %v447_v35  ;;  %v449_v40 = vpop.f32.mrb[2].mxu1  ;;  %v464_v44 = vmul.f32 %v447_v35, %v447_v35 }
 0x110   :  { %v409_v41 = vpop.f32.mrb[3].mxu0  ;;  %v450_v42 = vpop.f32.mrb[3].mxu1 }
 0x111   :  { %v457_v43 = vadd.f32 %v456_v36, %v445_v32  ;;  %v465_v45 = vadd.f32 %v462_v37, %v461_v33 }
 0x113   :  { %v458_v46 = vadd.f32 %v457_v43, %v447_v35  ;;  %v466_v47 = vadd.f32 %v465_v45, %v463_v38 }
 0x115   :  { %459 = vadd.xlane.f32.xlu0 %v458_v46  ;;  %v467_v48 = vadd.f32 %v466_v47, %v464_v44 }
 0x119   :  { %468 = vadd.xlane.f32.xlu0 %v467_v48 }
 0x129   :  { %v690_v49 = vpop.f32.mrb[4].mxu0  ;;  %v731_v50 = vpop.f32.mrb[4].mxu1 }
 0x12a   :  { %v748_v51 = vsel %vm357_vm1, %v690_v49, 0.0  ;;  %v757_v52 = vmul.f32 %v690_v49, %v690_v49  ;;  %v759_v53 = vmul.f32 %v731_v50, %v731_v50  ;;  %v692_v54 = vpop.f32.mrb[5].mxu0  ;;  %v733_v55 = vpop.f32.mrb[5].mxu1  ;;  %v751_v56 = vsel %vm357_vm1, %v731_v50, 0.0 }
 0x12b   :  { %v742_v57 = vcombine.low %v690_v49, %v692_v54  ;;  %v749_v58 = vsel %vm357_vm1, %v692_v54, 0.0  ;;  %v758_v59 = vmul.f32 %v692_v54, %v692_v54  ;;  %v743_v60 = vcombine.low %v731_v50, %v733_v55  ;;  %v694_v61 = vpop.f32.mrb[6].mxu0  ;;  %v735_v62 = vpop.f32.mrb[6].mxu1 }
 0x12c   :  { %v761_v63 = vsel %vm357_vm1, %v757_v52, 0.0  ;;  %v695_v0 = vpop.f32.mrb[7].mxu0  ;;  %v736_v1 = vpop.f32.mrb[7].mxu1  ;;  %v750_v2 = vadd.f32 %v749_v58, %v748_v51  ;;  %v760_v4 = vmul.f32 %v733_v55, %v733_v55  ;;  %v764_v5 = vsel %vm357_vm1, %v759_v53, 0.0 }
 0x12d   :  { %746 = vst [vmem:[%s1344_s5] sm:$0xff] %v742_v57  ;;  %v762_v3 = vsel %vm357_vm1, %v758_v59, 0.0  ;;  %747 = vst [vmem:[%s1344_s5 + $0x8] sm:$0xff] %v743_v60  ;;  %v753_v8 = vsel %vm357_vm1, %v733_v55, 0.0 }
 0x12e   :  { %v752_v6 = vadd.f32 %v751_v56, %v750_v2  ;;  %v763_v7 = vadd.f32 %v762_v3, %v761_v63  ;;  %v766_v11 = vsel %vm357_vm1, %v760_v4, 0.0 }
 0x130   :  { %v754_v9 = vadd.f32 %v753_v8, %v752_v6  ;;  %v765_v10 = vadd.f32 %v764_v5, %v763_v7 }
 0x132   :  { %755 = vadd.xlane.f32.xlu1 %v754_v9  ;;  %v767_v12 = vadd.f32 %v766_v11, %v765_v10 }
 0x136   :  { %768 = vadd.xlane.f32.xlu1 %v767_v12 }
 0x1a2   :  { %v460_v13 = vpop.xlane.xlu0 %459 }
 0x1a6   :  { %v469_v14 = vpop.xlane.xlu0 %468 }
 0x1a7   :  { %v471_v15 = vsel %vm470_vm4, %v460_v13, %v469_v14 }
 0x1a8   :  { %473 = vst.msk [vmem:[%s1345_s6] sm:$0xff] %vm472_vm5, %v471_v15 }
 0x1bf   :  { %v756_v16 = vpop.xlane.xlu1 %755 }
 0x1c3   :  { %v769_v17 = vpop.xlane.xlu1 %768 }
 0x1c4   :  { %v770_v18 = vsel %vm470_vm4, %v756_v16, %v769_v17 }
 0x1c5   :  { %772 = vst.msk [vmem:[%s1346_s7] sm:$0xf] %vm771_vm6, %v770_v18 }

// kernel: resblock3d_forward.9
= control target key start
LH: loop header
LB: loop body
LE: loop exit
PB: predicated region body
PF: predicated region fallthrough
CT: control target
= control target key end

     0   :  { %v101_v0 = vmov 0   ;;  %v102_v5 = vmov 839922192   ;;  %v33_v7 = vlaneseq  ;;  %s168_s4 = inlined_call_operand.vmem [shape: f32[4,1], index: 4, kind: input, shape index: {}]   ;;  %s169_s2 = inlined_call_operand.vmem [shape: f32[4,1], index: 2, kind: input, shape index: {}]   ;;  %s170_s5 = inlined_call_operand.vmem [shape: f32[4,1], index: 5, kind: input, shape index: {}]   ;;  %s171_s3 = inlined_call_operand.vmem [shape: f32[4,1], index: 3, kind: input, shape index: {}]   ;;  %s172_s1 = inlined_call_operand.vmem [shape: f32[4,512], index: 1, kind: input, shape index: {}]   ;;  %s173_s0 = inlined_call_operand.vmem [shape: f32[4,512], index: 0, kind: input, shape index: {}]   ;;  %s174_s6 = inlined_call_operand.vmem [shape: f32[4,512], index: 6, kind: output, shape index: {}]  }
   0x1   :  { %100 = vset.pattern.permute.xlu1 %v101_v0  ;;  %99 = vset.pattern.permute.xlu0 %v101_v0  ;;  %v57_v1 = vld [vmem:[%s168_s4] sm:$0xf]  ;;  %v31_v6 = vunpack.c.l.s4 %v102_v5  ;;  %v56_v16 = vld [vmem:[%s172_s1 + $0x8] sm:$0xff] }
   0x2   :  { %v25_v2 = vld [vmem:[%s169_s2] sm:$0xf]  ;;  %60 = vperm.xlu1 %100, %v57_v1   ;;  %v34_v9 = vshrl.u32 %v33_v7, 7  ;;  %v24_v18 = vld [vmem:[%s173_s0 + $0x8] sm:$0xff] }
   0x3   :  { %28 = vperm.xlu0 %99, %v25_v2   ;;  %v74_v3 = vld [vmem:[%s170_s5] sm:$0xf]  ;;  %v32_v8 = vunpack.c.0.s8 %v31_v6 }
   0x4   :  { %v40_v4 = vld [vmem:[%s171_s3] sm:$0xf] }
   0x5   :  { %v35_v10 = vsub.s32 %v32_v8, %v34_v9  ;;  %v55_v13 = vld [vmem:[%s172_s1] sm:$0xff] }
   0x6   :  { %77 = vperm.xlu1 %100, %v74_v3   ;;  %v23_v17 = vld [vmem:[%s173_s0] sm:$0xff] }
   0x7   :  { %43 = vperm.xlu0 %99, %v40_v4  }
  0x81   :  { %v61_v11 = vpop.permute.xlu1 %60 }
  0x82   :  { %v29_v12 = vpop.permute.xlu0 %28  ;;  %v68_v14 = vrot.slane %v61_v11, %v35_v10 }
  0x83   :  { %v36_v15 = vrot.slane %v29_v12, %v35_v10 }
  0x84   :  { %v70_v19 = vmul.f32 %v68_v14, %v55_v13  ;;  %v71_v21 = vmul.f32 %v68_v14, %v56_v16 }
  0x85   :  { %v38_v22 = vmul.f32 %v36_v15, %v23_v17  ;;  %v39_v23 = vmul.f32 %v36_v15, %v24_v18  ;;  %v78_v25 = vpop.permute.xlu1 %77 }
  0x86   :  { %v44_v20 = vpop.permute.xlu0 %43  ;;  %v85_v28 = vrot.slane %v78_v25, %v35_v10 }
  0x87   :  { %v51_v24 = vrot.slane %v44_v20, %v35_v10 }
  0x89   :  { %v53_v26 = vadd.f32 %v51_v24, %v38_v22  ;;  %v54_v27 = vadd.f32 %v51_v24, %v39_v23 }
  0x8b   :  { %v72_v29 = vadd.f32 %v70_v19, %v53_v26  ;;  %v73_v30 = vadd.f32 %v71_v21, %v54_v27 }
  0x8d   :  { %v87_v31 = vadd.f32 %v85_v28, %v72_v29  ;;  %v88_v32 = vadd.f32 %v85_v28, %v73_v30 }
  0x8f   :  { %v89_v33 = vmax.f32 %v87_v31, 0.0  ;;  %v90_v34 = vmax.f32 %v88_v32, 0.0 }
  0x91   :  { %91 = vst [vmem:[%s174_s6] sm:$0xff] %v89_v33  ;;  %92 = vst [vmem:[%s174_s6 + $0x8] sm:$0xff] %v90_v34 }

</bundles_post_ra>
